<compile_context>
chip_gen: v7x
topology: tpu7x:2x2x1
jax: 0.10.0
libtpu: 0.0.40
codegen_flags: <defaults>
</compile_context>

<pallas_src>
import functools

import jax
import jax.numpy as jnp
from jax import lax
from jax.experimental import pallas as pl
from jax.experimental.pallas import tpu as pltpu

BN_EPS = 1e-5
LANE = 128
SUBLANE = 8


def _round_up(a, b):
    return (a + b - 1) // b * b


def _vmem_budget_bytes():
    """Per-generation VMEM budget: half of physical (v5e/v6e 128 MiB, v7x 64 MiB)."""
    try:
        cap = int(pltpu.get_tpu_info().vmem_capacity_bytes)
    except Exception:
        cap = 64 * 1024 * 1024
    return int(min(cap // 2, 96 * 1024 * 1024))


def _fused_cnn_bn_htanh_kernel(g_ref, w_ref, gamma_ref, beta_ref, o_ref,
                               sum_ref, ssq_ref, *, n_batch, inv_m):
    """One grid step per batch image.

    g_ref:     (1, K_pad, S_pad)   im2col patches for this image (f32)
    w_ref:     (C_pad, K_pad)      flattened conv weight (f32, held resident)
    gamma_ref: (C_pad, 1)          BN gamma
    beta_ref:  (C_pad, 1)          BN beta
    o_ref:     (N, C_pad, S_pad)   full output, resident in VMEM across the grid
    sum_ref, ssq_ref: (C_pad, 1)   per-channel running sums (VMEM scratch)
    """
    b = pl.program_id(0)

    # Conv tile as a single MXU matmul.  Cast to bf16 in-register (products are
    # exact, accumulation stays f32).  The conv bias is omitted on purpose: a
    # per-channel bias cancels exactly under train-mode BN mean subtraction.
    y = jnp.dot(w_ref[...].astype(jnp.bfloat16),
                g_ref[0].astype(jnp.bfloat16),
                preferred_element_type=jnp.float32)           # (C_pad, S_pad)

    # Stash the raw conv output in the resident output buffer; it is normalized
    # in place on the last grid step (y never touches HBM).
    o_ref[b] = y

    # Per-channel partial statistics (lane reduction on the XLU).  Padded lanes
    # / padded K rows / padded channels are exact zeros, so they contribute 0.
    ps = jnp.sum(y, axis=1, keepdims=True)                    # (C_pad, 1)
    pss = jnp.sum(y * y, axis=1, keepdims=True)               # (C_pad, 1)

    @pl.when(b == 0)
    def _init():
        sum_ref[...] = ps
        ssq_ref[...] = pss

    @pl.when(b > 0)
    def _accum():
        sum_ref[...] = sum_ref[...] + ps
        ssq_ref[...] = ssq_ref[...] + pss

    @pl.when(b == pl.num_programs(0) - 1)
    def _finalize():
        mean = sum_ref[...] * inv_m                           # (C_pad, 1)
        # TODO(synk): E[y^2] - E[y]^2 can cancel for large-mean channels; with y
        # resident in VMEM a centered second sweep would be exact if needed.
        var = jnp.maximum(ssq_ref[...] * inv_m - mean * mean, 0.0)
        scale = gamma_ref[...] * lax.rsqrt(var + BN_EPS)      # EUP rsqrt
        shift = beta_ref[...] - mean * scale
        for i in range(n_batch):                              # static unroll
            o_ref[i] = jnp.clip(o_ref[i] * scale + shift, -1.0, 1.0)


@functools.partial(jax.jit, static_argnames=("kernel_size", "stride", "padding"))
def cnn_layer_forward(x, sequence_lengths, weight, bias, gamma, beta,
                      kernel_size, stride, padding):
    del bias  # cancels exactly under train-mode BatchNorm (see kernel comment)
    n, c_in, h, w = x.shape
    c_out = weight.shape[0]
    kh = kw = kernel_size
    s, p = stride, padding

    # calc_new_sequence_length
    new_seq = jnp.maximum((sequence_lengths + 2 * p - kw) // s + 1, 1)

    oh = (h + 2 * p - kh) // s + 1
    ow = (w + 2 * p - kw) // s + 1
    s_sp = oh * ow                      # spatial positions per image (lane axis)
    k = c_in * kh * kw                  # contraction length
    m = n * s_sp                        # BN reduction count (N*OH*OW)

    c_pad = _round_up(c_out, SUBLANE)
    k_pad = _round_up(k, LANE)
    s_pad = _round_up(s_sp, LANE)

    # im2col directly in the transposed layout the kernel wants: (N, K, S) with
    # flattened (oh, ow) on lanes and K ordered (ci, kh, kw) to match PyTorch's
    # weight.reshape(C_out, -1).  Stays in f32 (no wrapper-side bf16 pass).
    xp = jnp.pad(x, ((0, 0), (0, 0), (p, p), (p, p)))
    cols = [xp[:, :, i:i + s * oh:s, j:j + s * ow:s]          # (N, C_in, OH, OW)
            for i in range(kh) for j in range(kw)]
    g = jnp.stack(cols, axis=2)                               # (N, C_in, kh*kw, OH, OW)
    g = g.reshape(n, k, s_sp)
    g = jnp.pad(g, ((0, 0), (0, k_pad - k), (0, s_pad - s_sp)))

    w2d = jnp.pad(weight.reshape(c_out, k),
                  ((0, c_pad - c_out), (0, k_pad - k)))
    gamma2 = jnp.pad(gamma, (0, c_pad - c_out)).reshape(c_pad, 1)
    beta2 = jnp.pad(beta, (0, c_pad - c_out)).reshape(c_pad, 1)

    # Fused path keeps the whole (N, C_pad, S_pad) f32 output resident in VMEM.
    budget = _vmem_budget_bytes()
    resident_bytes = 4 * (n * c_pad * s_pad            # resident output
                          + 2 * k_pad * s_pad          # double-buffered patches
                          + c_pad * k_pad              # resident weight
                          + 4 * c_pad)                 # stats / gamma / beta
    assert resident_bytes <= budget, (
        "fused CNN+BN working set exceeds the per-generation VMEM budget; "
        "TODO(synk): add a tiled two-pass fallback for very large inputs")

    out_pad = pl.pallas_call(
        functools.partial(_fused_cnn_bn_htanh_kernel, n_batch=n, inv_m=1.0 / m),
        grid=(n,),
        in_specs=[
            pl.BlockSpec((1, k_pad, s_pad), lambda b: (b, 0, 0)),
            pl.BlockSpec((c_pad, k_pad), lambda b: (0, 0)),
            pl.BlockSpec((c_pad, 1), lambda b: (0, 0)),
            pl.BlockSpec((c_pad, 1), lambda b: (0, 0)),
        ],
        out_specs=pl.BlockSpec((n, c_pad, s_pad), lambda b: (0, 0, 0)),
        out_shape=jax.ShapeDtypeStruct((n, c_pad, s_pad), jnp.float32),
        scratch_shapes=[pltpu.VMEM((c_pad, 1), jnp.float32),
                        pltpu.VMEM((c_pad, 1), jnp.float32)],
        compiler_params=pltpu.CompilerParams(
            # stats accumulate and the output stays resident across this axis
            dimension_semantics=("arbitrary",),
            vmem_limit_bytes=budget),
    )(g, w2d, gamma2, beta2)

    # C is already the leading per-image axis: NCHW needs only a slice of the
    # channel/lane padding (a no-op when there is none) and a free reshape.
    out = out_pad[:, :c_out, :s_sp].reshape(n, c_out, oh, ow)
    return out, new_seq


def _reference(x, weight, bias, gamma, beta, stride, padding):
    """Plain-JAX reference: conv + train-mode BN + Hardtanh.

    Inputs are rounded through bf16 to mirror the kernel's bf16 MXU operands
    (products exact in f32, accumulation in f32)."""
    xb = x.astype(jnp.bfloat16).astype(jnp.float32)
    wb = weight.astype(jnp.bfloat16).astype(jnp.float32)
    y = lax.conv_general_dilated(
        xb, wb, window_strides=(stride, stride),
        padding=[(padding, padding), (padding, padding)],
        dimension_numbers=("NCHW", "OIHW", "NCHW"),
        precision=lax.Precision.HIGHEST)
    y = y + bias[None, :, None, None]
    mean = jnp.mean(y, axis=(0, 2, 3), keepdims=True)
    var = jnp.mean((y - mean) ** 2, axis=(0, 2, 3), keepdims=True)
    y = (y - mean) * lax.rsqrt(var + BN_EPS)
    y = y * gamma[None, :, None, None] + beta[None, :, None, None]
    return jnp.clip(y, -1.0, 1.0)


if __name__ == "__main__":
    key = jax.random.PRNGKey(0)
    k_x, k_w = jax.random.split(key)

    # Module config (small): Conv2d(4 -> 8, kernel 3, stride 2, padding 1)
    N, C_IN, H, W = 2, 4, 16, 16
    C_OUT, KSIZE, STRIDE, PAD = 8, 3, 2, 1

    x = jax.random.normal(k_x, (N, C_IN, H, W), dtype=jnp.float32)
    seq_lens = jnp.array([16, 12], dtype=jnp.int32)

    # Deterministic init mirroring the module __init__:
    # xavier_normal_(weight, gain=1), bias = 0, BN gamma = 1, beta = 0.
    fan_in = C_IN * KSIZE * KSIZE
    fan_out = C_OUT * KSIZE * KSIZE
    xavier_std = (2.0 / (fan_in + fan_out)) ** 0.5
    weight = xavier_std * jax.random.normal(
        k_w, (C_OUT, C_IN, KSIZE, KSIZE), dtype=jnp.float32)
    bias = jnp.zeros((C_OUT,), dtype=jnp.float32)
    gamma = jnp.ones((C_OUT,), dtype=jnp.float32)
    beta = jnp.zeros((C_OUT,), dtype=jnp.float32)

    out, new_seq = cnn_layer_forward(
        x, seq_lens, weight, bias, gamma, beta,
        kernel_size=KSIZE, stride=STRIDE, padding=PAD)
    out = jax.block_until_ready(out)
    new_seq = jax.block_until_ready(new_seq)

    # Sanity check against a plain-JAX reference.
    ref = _reference(x, weight, bias, gamma, beta, STRIDE, PAD)
    assert out.shape == (N, C_OUT, H // STRIDE, W // STRIDE), out.shape
    max_err = float(jnp.max(jnp.abs(out - ref)))
    assert max_err < 5e-4, max_err
    assert jnp.array_equal(new_seq, jnp.array([8, 6], dtype=jnp.int32))

    print("KERNEL_OK")
</pallas_src>

<mosaic_0001>
module attributes {stable_mosaic.version = 11 : i64} {
  func.func @_fused_cnn_bn_htanh_kernel(%arg0: i32, %arg1: memref<1x128x128xf32, #tpu.memory_space<vmem>>, %arg2: memref<8x128xf32, #tpu.memory_space<vmem>>, %arg3: memref<8x1xf32, #tpu.memory_space<vmem>>, %arg4: memref<8x1xf32, #tpu.memory_space<vmem>>, %arg5: memref<2x8x128xf32, #tpu.memory_space<vmem>>, %arg6: memref<8x1xf32, #tpu.memory_space<vmem>>, %arg7: memref<8x1xf32, #tpu.memory_space<vmem>>) attributes {dimension_semantics = [#tpu.dimension_semantics<arbitrary>], iteration_bounds = array<i64: 2>, scalar_prefetch = 0 : i64, scratch_operands = 2 : i64, tpu.core_type = #tpu.core_type<tc>, window_params = [{transform_indices = @transform_0, window_bounds = array<i64: 1, 128, 128>}, {pipeline_mode = #tpu.pipeline_mode<synchronous>, transform_indices = @transform_1, window_bounds = array<i64: 8, 128>}, {pipeline_mode = #tpu.pipeline_mode<synchronous>, transform_indices = @transform_2, window_bounds = array<i64: 8, 1>}, {pipeline_mode = #tpu.pipeline_mode<synchronous>, transform_indices = @transform_3, window_bounds = array<i64: 8, 1>}, {pipeline_mode = #tpu.pipeline_mode<synchronous>, transform_indices = @transform_4, window_bounds = array<i64: 2, 8, 128>}]} {
    %c0 = arith.constant 0 : index
    %c0_0 = arith.constant 0 : index
    %0 = vector.load %arg2[%c0, %c0_0] : memref<8x128xf32, #tpu.memory_space<vmem>>, vector<8x128xf32>
    %1 = arith.truncf %0 : vector<8x128xf32> to vector<8x128xbf16>
    %c0_1 = arith.constant 0 : index
    %c0_2 = arith.constant 0 : index
    %c0_3 = arith.constant 0 : index
    %2 = vector.load %arg1[%c0_1, %c0_2, %c0_3] : memref<1x128x128xf32, #tpu.memory_space<vmem>>, vector<1x128x128xf32>
    %3 = vector.shape_cast %2 : vector<1x128x128xf32> to vector<128x128xf32>
    %4 = arith.truncf %3 : vector<128x128xf32> to vector<128x128xbf16>
    %cst = arith.constant dense<0.000000e+00> : vector<8x128xf32>
    %5 = tpu.matmul %1, %4, %cst {dimension_numbers = #tpu.dot_dimension_numbers<[1], [0], [0], [1], [0, 0, 1, 1], [], []>} : vector<8x128xbf16>, vector<128x128xbf16>, vector<8x128xf32> -> vector<8x128xf32>
    %6 = arith.index_cast %arg0 : i32 to index
    %c0_4 = arith.constant 0 : index
    %c0_5 = arith.constant 0 : index
    %7 = vector.load %arg5[%6, %c0_4, %c0_5] : memref<2x8x128xf32, #tpu.memory_space<vmem>>, vector<1x8x128xf32>
    %8 = vector.shape_cast %7 : vector<1x8x128xf32> to vector<8x128xf32>
    %9 = vector.shape_cast %5 : vector<8x128xf32> to vector<1x8x128xf32>
    tpu.vector_store %arg5[%6, %c0_4, %c0_5], %9 {strides = array<i32>} : memref<2x8x128xf32, #tpu.memory_space<vmem>>, vector<1x8x128xf32>,
    %cst_6 = arith.constant dense<0.000000e+00> : vector<8xf32>
    %10 = vector.multi_reduction <add>, %5, %cst_6 [1] : vector<8x128xf32> to vector<8xf32>
    %11 = vector.shape_cast %10 : vector<8xf32> to vector<8x1xf32>
    %12 = arith.mulf %5, %5 : vector<8x128xf32>
    %cst_7 = arith.constant dense<0.000000e+00> : vector<8xf32>
    %13 = vector.multi_reduction <add>, %12, %cst_7 [1] : vector<8x128xf32> to vector<8xf32>
    %14 = vector.shape_cast %13 : vector<8xf32> to vector<8x1xf32>
    %c0_i32 = arith.constant 0 : i32
    %15 = arith.cmpi eq, %arg0, %c0_i32 : i32
    %16 = arith.extui %15 : i1 to i32
    %c0_i32_8 = arith.constant 0 : i32
    %17 = arith.cmpi ne, %16, %c0_i32_8 : i32
    scf.if %17 {
      %c0_12 = arith.constant 0 : index
      %c0_13 = arith.constant 0 : index
      %24 = vector.load %arg6[%c0_12, %c0_13] : memref<8x1xf32, #tpu.memory_space<vmem>>, vector<8x1xf32>
      tpu.vector_store %arg6[%c0_12, %c0_13], %11 {strides = array<i32>} : memref<8x1xf32, #tpu.memory_space<vmem>>, vector<8x1xf32>,
      %c0_14 = arith.constant 0 : index
      %c0_15 = arith.constant 0 : index
      %25 = vector.load %arg7[%c0_14, %c0_15] : memref<8x1xf32, #tpu.memory_space<vmem>>, vector<8x1xf32>
      tpu.vector_store %arg7[%c0_14, %c0_15], %14 {strides = array<i32>} : memref<8x1xf32, #tpu.memory_space<vmem>>, vector<8x1xf32>,
    } else {
    }
    %c0_i32_9 = arith.constant 0 : i32
    %18 = arith.cmpi sgt, %arg0, %c0_i32_9 : i32
    %19 = arith.extui %18 : i1 to i32
    %c0_i32_10 = arith.constant 0 : i32
    %20 = arith.cmpi ne, %19, %c0_i32_10 : i32
    scf.if %20 {
      %c0_12 = arith.constant 0 : index
      %c0_13 = arith.constant 0 : index
      %24 = vector.load %arg6[%c0_12, %c0_13] : memref<8x1xf32, #tpu.memory_space<vmem>>, vector<8x1xf32>
      %25 = arith.addf %24, %11 : vector<8x1xf32>
      %c0_14 = arith.constant 0 : index
      %c0_15 = arith.constant 0 : index
      %26 = vector.load %arg6[%c0_14, %c0_15] : memref<8x1xf32, #tpu.memory_space<vmem>>, vector<8x1xf32>
      tpu.vector_store %arg6[%c0_14, %c0_15], %25 {strides = array<i32>} : memref<8x1xf32, #tpu.memory_space<vmem>>, vector<8x1xf32>,
      %c0_16 = arith.constant 0 : index
      %c0_17 = arith.constant 0 : index
      %27 = vector.load %arg7[%c0_16, %c0_17] : memref<8x1xf32, #tpu.memory_space<vmem>>, vector<8x1xf32>
      %28 = arith.addf %27, %14 : vector<8x1xf32>
      %c0_18 = arith.constant 0 : index
      %c0_19 = arith.constant 0 : index
      %29 = vector.load %arg7[%c0_18, %c0_19] : memref<8x1xf32, #tpu.memory_space<vmem>>, vector<8x1xf32>
      tpu.vector_store %arg7[%c0_18, %c0_19], %28 {strides = array<i32>} : memref<8x1xf32, #tpu.memory_space<vmem>>, vector<8x1xf32>,
    } else {
    }
    %c1_i32 = arith.constant 1 : i32
    %21 = arith.cmpi eq, %arg0, %c1_i32 : i32
    %22 = arith.extui %21 : i1 to i32
    %c0_i32_11 = arith.constant 0 : i32
    %23 = arith.cmpi ne, %22, %c0_i32_11 : i32
    scf.if %23 {
      %c0_12 = arith.constant 0 : index
      %c0_13 = arith.constant 0 : index
      %24 = vector.load %arg6[%c0_12, %c0_13] : memref<8x1xf32, #tpu.memory_space<vmem>>, vector<8x1xf32>
      %cst_14 = arith.constant 7.812500e-03 : f32
      %25 = vector.broadcast %cst_14 : f32 to vector<8x1xf32>
      %26 = arith.mulf %24, %25 : vector<8x1xf32>
      %c0_15 = arith.constant 0 : index
      %c0_16 = arith.constant 0 : index
      %27 = vector.load %arg7[%c0_15, %c0_16] : memref<8x1xf32, #tpu.memory_space<vmem>>, vector<8x1xf32>
      %cst_17 = arith.constant 7.812500e-03 : f32
      %28 = vector.broadcast %cst_17 : f32 to vector<8x1xf32>
      %29 = arith.mulf %27, %28 : vector<8x1xf32>
      %30 = arith.mulf %26, %26 : vector<8x1xf32>
      %31 = arith.subf %29, %30 : vector<8x1xf32>
      %cst_18 = arith.constant 0.000000e+00 : f32
      %32 = vector.broadcast %cst_18 : f32 to vector<8x1xf32>
      %33 = arith.maximumf %31, %32 : vector<8x1xf32>
      %c0_19 = arith.constant 0 : index
      %c0_20 = arith.constant 0 : index
      %34 = vector.load %arg3[%c0_19, %c0_20] : memref<8x1xf32, #tpu.memory_space<vmem>>, vector<8x1xf32>
      %cst_21 = arith.constant 9.99999974E-6 : f32
      %35 = vector.broadcast %cst_21 : f32 to vector<8x1xf32>
      %36 = arith.addf %33, %35 : vector<8x1xf32>
      %37 = math.rsqrt %36 : vector<8x1xf32>
      %38 = arith.mulf %34, %37 : vector<8x1xf32>
      %c0_22 = arith.constant 0 : index
      %c0_23 = arith.constant 0 : index
      %39 = vector.load %arg4[%c0_22, %c0_23] : memref<8x1xf32, #tpu.memory_space<vmem>>, vector<8x1xf32>
      %40 = arith.mulf %26, %38 : vector<8x1xf32>
      %41 = arith.subf %39, %40 : vector<8x1xf32>
      %c0_24 = arith.constant 0 : index
      %c0_25 = arith.constant 0 : index
      %c0_26 = arith.constant 0 : index
      %42 = vector.load %arg5[%c0_24, %c0_25, %c0_26] : memref<2x8x128xf32, #tpu.memory_space<vmem>>, vector<1x8x128xf32>
      %43 = vector.shape_cast %42 : vector<1x8x128xf32> to vector<8x128xf32>
      %44 = vector.broadcast %38 : vector<8x1xf32> to vector<8x128xf32>
      %45 = arith.mulf %43, %44 : vector<8x128xf32>
      %46 = vector.broadcast %41 : vector<8x1xf32> to vector<8x128xf32>
      %47 = arith.addf %45, %46 : vector<8x128xf32>
      %cst_27 = arith.constant -1.000000e+00 : f32
      %cst_28 = arith.constant 1.000000e+00 : f32
      %48 = vector.broadcast %cst_27 : f32 to vector<8x128xf32>
      %49 = arith.maximumf %48, %47 : vector<8x128xf32>
      %50 = vector.broadcast %cst_28 : f32 to vector<8x128xf32>
      %51 = arith.minimumf %50, %49 : vector<8x128xf32>
      %c0_29 = arith.constant 0 : index
      %c0_30 = arith.constant 0 : index
      %c0_31 = arith.constant 0 : index
      %52 = vector.load %arg5[%c0_29, %c0_30, %c0_31] : memref<2x8x128xf32, #tpu.memory_space<vmem>>, vector<1x8x128xf32>
      %53 = vector.shape_cast %52 : vector<1x8x128xf32> to vector<8x128xf32>
      %54 = vector.shape_cast %51 : vector<8x128xf32> to vector<1x8x128xf32>
      tpu.vector_store %arg5[%c0_29, %c0_30, %c0_31], %54 {strides = array<i32>} : memref<2x8x128xf32, #tpu.memory_space<vmem>>, vector<1x8x128xf32>,
      %c1 = arith.constant 1 : index
      %c0_32 = arith.constant 0 : index
      %c0_33 = arith.constant 0 : index
      %55 = vector.load %arg5[%c1, %c0_32, %c0_33] : memref<2x8x128xf32, #tpu.memory_space<vmem>>, vector<1x8x128xf32>
      %56 = vector.shape_cast %55 : vector<1x8x128xf32> to vector<8x128xf32>
      %57 = vector.broadcast %38 : vector<8x1xf32> to vector<8x128xf32>
      %58 = arith.mulf %56, %57 : vector<8x128xf32>
      %59 = vector.broadcast %41 : vector<8x1xf32> to vector<8x128xf32>
      %60 = arith.addf %58, %59 : vector<8x128xf32>
      %cst_34 = arith.constant -1.000000e+00 : f32
      %cst_35 = arith.constant 1.000000e+00 : f32
      %61 = vector.broadcast %cst_34 : f32 to vector<8x128xf32>
      %62 = arith.maximumf %61, %60 : vector<8x128xf32>
      %63 = vector.broadcast %cst_35 : f32 to vector<8x128xf32>
      %64 = arith.minimumf %63, %62 : vector<8x128xf32>
      %c1_36 = arith.constant 1 : index
      %c0_37 = arith.constant 0 : index
      %c0_38 = arith.constant 0 : index
      %65 = vector.load %arg5[%c1_36, %c0_37, %c0_38] : memref<2x8x128xf32, #tpu.memory_space<vmem>>, vector<1x8x128xf32>
      %66 = vector.shape_cast %65 : vector<1x8x128xf32> to vector<8x128xf32>
      %67 = vector.shape_cast %64 : vector<8x128xf32> to vector<1x8x128xf32>
      tpu.vector_store %arg5[%c1_36, %c0_37, %c0_38], %67 {strides = array<i32>} : memref<2x8x128xf32, #tpu.memory_space<vmem>>, vector<1x8x128xf32>,
    } else {
    }
    return
  }
  func.func @transform_0(%arg0: i32) -> (i32, i32, i32) {
    %c0_i32 = arith.constant 0 : i32
    %c0_i32_0 = arith.constant 0 : i32
    %c0_i32_1 = arith.constant 0 : i32
    return %arg0, %c0_i32, %c0_i32_0 : i32, i32, i32
  }
  func.func @transform_1(%arg0: i32) -> (i32, i32) {
    %c0_i32 = arith.constant 0 : i32
    %c0_i32_0 = arith.constant 0 : i32
    %c0_i32_1 = arith.constant 0 : i32
    return %c0_i32, %c0_i32_0 : i32, i32
  }
  func.func @transform_2(%arg0: i32) -> (i32, i32) {
    %c0_i32 = arith.constant 0 : i32
    %c0_i32_0 = arith.constant 0 : i32
    %c0_i32_1 = arith.constant 0 : i32
    return %c0_i32, %c0_i32_0 : i32, i32
  }
  func.func @transform_3(%arg0: i32) -> (i32, i32) {
    %c0_i32 = arith.constant 0 : i32
    %c0_i32_0 = arith.constant 0 : i32
    %c0_i32_1 = arith.constant 0 : i32
    return %c0_i32, %c0_i32_0 : i32, i32
  }
  func.func @transform_4(%arg0: i32) -> (i32, i32, i32) {
    %c0_i32 = arith.constant 0 : i32
    %c0_i32_0 = arith.constant 0 : i32
    %c0_i32_1 = arith.constant 0 : i32
    %c0_i32_2 = arith.constant 0 : i32
    return %c0_i32, %c0_i32_0, %c0_i32_1 : i32, i32, i32
  }
}

</mosaic_0001>

<bundles_post_ra>
// kernel: cnn_layer_forward.1
= control target key start
LH: loop header
LB: loop body
LE: loop exit
PB: predicated region body
PF: predicated region fallthrough
CT: control target
= control target key end

     0   :  { %s443_s15 = smov 0   ;;  %s507_s0 = inlined_call_operand.vmem [shape: f32[2,128,128], index: 0, kind: input, shape index: {}]   ;;  %s508_s1 = inlined_call_operand.vmem [shape: f32[8,128], index: 1, kind: input, shape index: {}]   ;;  %s509_s2 = inlined_call_operand.vmem [shape: f32[8,1], index: 2, kind: input, shape index: {}]   ;;  %s510_s3 = inlined_call_operand.vmem [shape: f32[8,1], index: 3, kind: input, shape index: {}]   ;;  %s511_s4 = inlined_call_operand.vmem [shape: f32[2,8,128], index: 4, kind: output, shape index: {}]  }
   0x1 LB: > { %s449_s16 = sadd.s32 4294967295, %s413_s15   ;;  %p350_p0 = scmp.ge.s32.totalorder %s413_s15, 1  ;;  %s413_s15 = sphi %s443_s15, %s14_s15  }
   0x2   : > { %p157_p1 = scmp.lt.s32.totalorder %s413_s15, 3 }
   0x4   : > { %p158_p2 = pnand %p350_p0, %p157_p1 }
   0x5   : > { %p178_p3 = scmp.lt.s32.totalorder (!%p158_p2), %s449_s16, 1  ;;  %v415_v0 = vmov (!%p158_p2), 0.0   ;;  %vm416_vm0 = vmmov (!%p158_p2), 0   ;;  %v184_v25 = vld [vmem:[%s508_s1] sm:$0xff] (!%p158_p2)  ;;  %s353_s24 = sshll.u32 (!%p158_p2), %s449_s16, 3 }
   0x6   : > { %161 = sbr.rel (%p158_p2) target bundleno = 585 (0x249), region = 36  ;;  %373 = vmatprep.subr.bf16.mxu0 (!%p158_p2), %v415_v0  ;;  %389 = vmatprep.mubr.msk.bf16.mxu0 (!%p158_p2), %vm416_vm0, %v415_v0  ;;  %v185_v26 = vpack.c.bf16 (!%p158_p2), %v184_v25, %v184_v25  ;;  %s251_s27 = scalar_lea.vmem (!%p158_p2), %s511_s4, %s353_s24 }
   0x7   : > { %p354_p4 = scmp.ne.s32.totalorder (!%p158_p2), %s449_s16, 0 }
   0xd   : > { %s179_s17 = scalar_select %p178_p3, %s449_s16, 1 }
   0xe   : > { %vm262_vm1 = vcmask (!%p354_p4), 7168  }
   0xf   : > { %s363_s18 = sshll.u32 %s179_s17, 7 }
  0x10   : > { %s458_s21 = scalar_lea.vmem %s507_s0, %s363_s18 }
  0x11   : > { %v186_v1 = vld [vmem:[%s458_s21] sm:$0xff]  ;;  %v187_v2 = vld [vmem:[%s458_s21 + $0x8] sm:$0xff]  ;;  %v188_v3 = vld [vmem:[%s458_s21 + $0x10] sm:$0xff] }
  0x12   : > { %v202_v4 = vpack.c.bf16 %v187_v2, %v186_v1  ;;  %v189_v5 = vld [vmem:[%s458_s21 + $0x18] sm:$0xff]  ;;  %v190_v7 = vld [vmem:[%s458_s21 + $0x20] sm:$0xff]  ;;  %v191_v8 = vld [vmem:[%s458_s21 + $0x28] sm:$0xff] }
  0x13   : > { %v203_v6 = vpack.c.bf16 %v189_v5, %v188_v3  ;;  %v204_v9 = vpack.c.bf16 %v191_v8, %v190_v7  ;;  %v192_v10 = vld [vmem:[%s458_s21 + $0x30] sm:$0xff]  ;;  %v193_v11 = vld [vmem:[%s458_s21 + $0x38] sm:$0xff]  ;;  %v194_v13 = vld [vmem:[%s458_s21 + $0x40] sm:$0xff] }
  0x14   : > { %374 = vmatpush3.bf16.msra.mxu0 %v202_v4  ;;  %v205_v12 = vpack.c.bf16 %v193_v11, %v192_v10  ;;  %v195_v14 = vld [vmem:[%s458_s21 + $0x48] sm:$0xff]  ;;  %v196_v16 = vld [vmem:[%s458_s21 + $0x50] sm:$0xff]  ;;  %v197_v17 = vld [vmem:[%s458_s21 + $0x58] sm:$0xff] }
  0x15   : > { %375 = vmatprep.subr.bf16.mxu0 %v415_v0  ;;  %v206_v15 = vpack.c.bf16 %v195_v14, %v194_v13  ;;  %v207_v18 = vpack.c.bf16 %v197_v17, %v196_v16  ;;  %v198_v19 = vld [vmem:[%s458_s21 + $0x60] sm:$0xff]  ;;  %v199_v20 = vld [vmem:[%s458_s21 + $0x68] sm:$0xff]  ;;  %v200_v22 = vld [vmem:[%s458_s21 + $0x70] sm:$0xff] }
  0x16   : > { %v208_v21 = vpack.c.bf16 %v199_v20, %v198_v19  ;;  %v201_v23 = vld [vmem:[%s458_s21 + $0x78] sm:$0xff] }
  0x17   : > { %v209_v24 = vpack.c.bf16 %v201_v23, %v200_v22 }
  0x18   : > { %376 = vmatpush3.bf16.msra.mxu0 %v203_v6 }
  0x19   : > { %377 = vmatprep.subr.bf16.mxu0 %v415_v0 }
  0x1c   : > { %378 = vmatpush3.bf16.msra.mxu0 %v204_v9 }
  0x1d   : > { %379 = vmatprep.subr.bf16.mxu0 %v415_v0 }
  0x20   : > { %380 = vmatpush3.bf16.msra.mxu0 %v205_v12 }
  0x21   : > { %381 = vmatprep.subr.bf16.mxu0 %v415_v0 }
  0x24   : > { %382 = vmatpush3.bf16.msra.mxu0 %v206_v15 }
  0x25   : > { %383 = vmatprep.subr.bf16.mxu0 %v415_v0 }
  0x28   : > { %384 = vmatpush3.bf16.msra.mxu0 %v207_v18 }
  0x29   : > { %385 = vmatprep.subr.bf16.mxu0 %v415_v0 }
  0x2c   : > { %386 = vmatpush3.bf16.msra.mxu0 %v208_v21 }
  0x2d   : > { %387 = vmatprep.subr.bf16.mxu0 %v415_v0 }
  0x30   : > { %388 = vmatpush3.bf16.msra.mxu0 %v209_v24 }
  0x33   : > { %390 = vmatmul.mubr.bf16.vlgmr.msra.gmra.mrb[0].mxu0 %v185_v26 }
 0x106   : > { %v244_v27 = vpop.f32.mrb[0].mxu0 }
 0x107   : > { %252 = vst [vmem:[%s251_s27] sm:$0xff] %v244_v27  ;;  %253 = vadd.xlane.f32.xlu0 %v244_v27  ;;  %v391_v28 = vpop.f32.mrb[1].mxu0  ;;  %v255_v31 = vmul.f32 %v244_v27, %v244_v27 }
 0x108   : > { %v247_v29 = vpop.f32.mrb[2].mxu0 }
 0x109   : > { %v392_v30 = vpop.f32.mrb[3].mxu0 }
 0x10b   : > { %256 = vadd.xlane.f32.xlu0 %v255_v31 }
 0x192   : > { %261 = sbr.rel (%p354_p4) target bundleno = 410 (0x19a), region = 40 }
 0x194   : > { %v254_v32 = vpop.xlane.xlu0 %253 }
 0x195   : > { %263 = vst.msk [vmem:[#allocation2] sm:$0xff] (!%p354_p4), %vm262_vm1, %v254_v32 }
 0x198   : > { %v257_v33 = vpop.xlane.xlu0 %256 }
 0x199   : > { %264 = vst.msk [vmem:[#allocation3] sm:$0xff] %vm262_vm1, %v257_v33 }
 0x19a PF: > { %p355_p5 = scmp.le.s32.totalorder %s449_s16, 0 }
 0x19b   : > { %vm271_vm2 = vcmask (!%p355_p5), 7168  }
 0x19c   : > { %268 = sbr.rel (%p355_p5) target bundleno = 420 (0x1a4), region = 44 }
 0x19d   : > { %v269_v34 = vld [vmem:[#allocation2] sm:$0xff] (!%p355_p5) }
 0x19e   : > { %v270_v36 = vadd.f32 (!%p355_p5), %v269_v34, %v254_v32 }
 0x1a0   : > { %v273_v35 = vld [vmem:[#allocation3] sm:$0xff] (!%p355_p5)  ;;  %272 = vst.msk [vmem:[#allocation2] sm:$0xff] (!%p355_p5), %vm271_vm2, %v270_v36 }
 0x1a1   : > { %v274_v37 = vadd.f32 (!%p355_p5), %v273_v35, %v257_v33 }
 0x1a3   : > { %275 = vst.msk [vmem:[#allocation3] sm:$0xff] %vm271_vm2, %v274_v37 }
 0x1a4 PF: > { %p356_p6 = scmp.ne.s32.totalorder %s449_s16, 1 }
 0x1a5   : > { %v417_v40 = vmov (!%p356_p6), 0   ;;  %v287_v47 = vld [vmem:[%s509_s2] sm:$0xff] (!%p356_p6)  ;;  %v358_v54 = vld [vmem:[%s511_s4 + $0x8] sm:$0xff] (!%p356_p6) }
 0x1a6   : > { %279 = sbr.rel (%p356_p6) target bundleno = 585 (0x249), region = 48  ;;  %404 = vset.pattern.permute.xlu0 (!%p356_p6), %v417_v40  ;;  %v291_v50 = vld [vmem:[%s510_s3] sm:$0xff] (!%p356_p6) }
 0x1a7   : > { %v294_v53 = vld [vmem:[%s511_s4] sm:$0xff] (!%p356_p6) }
 0x1a8   : > { %v280_v38 = vld [vmem:[#allocation2] sm:$0xff] (!%p356_p6) }
 0x1a9   : > { %v281_v41 = vmul.f32 (!%p356_p6), 0.0078125, %v280_v38 }
 0x1aa   : > { %v282_v39 = vld [vmem:[#allocation3] sm:$0xff] (!%p356_p6) }
 0x1ab   : > { %v283_v42 = vmul.f32 (!%p356_p6), 0.0078125, %v282_v39  ;;  %v284_v43 = vmul.f32 (!%p356_p6), %v281_v41, %v281_v41 }
 0x1ad   : > { %v285_v44 = vsub.f32 %v283_v42, %v284_v43 }
 0x1af   : > { %v286_v45 = vmax.f32 %v285_v44, 0.0 }
 0x1b1   : > { %v288_v46 = vadd.f32 1e-05, %v286_v45 }
 0x1b3   : > { %405 = vrsqrt.f32 %v288_v46 }
 0x1bd   : > { %v406_v48 = vpop.eup %405 }
 0x1be   : > { %v290_v49 = vmul.f32 %v406_v48, %v287_v47 }
 0x1c0   : > { %297 = vperm.xlu0 %404, %v290_v49   ;;  %v292_v51 = vmul.f32 %v290_v49, %v281_v41 }
 0x1c2   : > { %v293_v52 = vsub.f32 %v291_v50, %v292_v51 }
 0x1c4   : > { %303 = vperm.xlu0 %404, %v293_v52  }
 0x23f   : > { %v298_v55 = vpop.permute.xlu0 %297 }
 0x240   : > { %v300_v56 = vmul.f32 %v298_v55, %v294_v53  ;;  %v312_v57 = vmul.f32 %v358_v54, %v298_v55 }
 0x243   : > { %v304_v58 = vpop.permute.xlu0 %303 }
 0x244   : > { %v306_v59 = vadd.f32 %v304_v58, %v300_v56  ;;  %v313_v60 = vadd.f32 %v312_v57, %v304_v58 }
 0x246   : > { %v357_v61 = vclamps-f32 %v306_v59, 1.0  ;;  %v359_v62 = vclamps-f32 %v313_v60, 1.0 }
 0x248   : > { %309 = vst [vmem:[%s511_s4] sm:$0xff] %v357_v61  ;;  %360 = vst [vmem:[%s511_s4 + $0x8] sm:$0xff] %v359_v62 }
 0x249 PF: > { %s14_s15 = sadd.s32 1, %s413_s15  }
 0x24a   : > { %p11_p7 = scmp.ge.s32.totalorder %s14_s15, 4  }
 0x24c   :  { %13 = sbr.rel (!%p11_p7) target bundleno = 1 (0x1), region = 76 }

</bundles_post_ra>
